<compile_context>
chip_gen: v5e
topology: v5e:2x2
jax: 0.10.0
libtpu: 0.0.40
codegen_flags: <defaults>
</compile_context>

<pallas_src>
import functools

import jax
import jax.numpy as jnp
import numpy as np
from jax.experimental import pallas as pl
from jax.experimental.pallas import tpu as pltpu


_CompilerParams = getattr(pltpu, "CompilerParams", None)
if _CompilerParams is None:  # very old jax fallback
    _CompilerParams = getattr(pltpu, "TPUCompilerParams")


# ----------------------------------------------------------------------------
# Kernel
# ----------------------------------------------------------------------------
def critic_kernel(x_ref, we_ref, whs_ref, wha_ref, wf_ref, bias_ref, q_ref, *,
                  state_dim, feature_dim, split_whs):
    f32 = jnp.float32
    cdt = we_ref.dtype                      # MXU operand dtype (f32 or bf16)

    s = x_ref[:, :state_dim]                # (TB, S)  already compute dtype
    a = x_ref[:, state_dim:]                # (TB, A)

    be = bias_ref[0:1, :]                   # (1, 2F)  encoder biases (f32)
    bh = bias_ref[1:2, :]                   # (1, 2F)  head biases    (f32)
    bf = bias_ref[2:3, 0:2]                 # (1, 2)   fc biases      (f32)

    # encoder (both branches fused): ReLU(s @ [We1|We2] + [be1|be2]) -> (TB, 2F)
    enc = jnp.dot(s, we_ref[...], preferred_element_type=f32) + be
    enc = jnp.maximum(enc, 0.0).astype(cdt)

    # head: ReLU(cat([enc, a], 1) @ Wh + bh); the torch.cat is folded into the
    # state-part Whs (block-diag or per-branch) plus a concatenated Wha.
    if split_whs:
        # whs_ref is (2, F, F): one slab per branch -- avoids multiplying the
        # zero half of a (2F, 2F) block-diagonal slab once 2F > one MXU tile.
        h = jnp.concatenate(
            [jnp.dot(enc[:, :feature_dim], whs_ref[0], preferred_element_type=f32),
             jnp.dot(enc[:, feature_dim:], whs_ref[1], preferred_element_type=f32)],
            axis=-1)
    else:
        # whs_ref is block-diagonal (2F, 2F): a single MXU dot.
        h = jnp.dot(enc, whs_ref[...], preferred_element_type=f32)
    h = h + jnp.dot(a, wha_ref[...], preferred_element_type=f32) + bh
    h = jnp.maximum(h, 0.0).astype(cdt)

    # fc (block-diagonal): one lane-dense (TB, 2) result; col0 = q1, col1 = q2.
    q = jnp.dot(h, wf_ref[...], preferred_element_type=f32) + bf
    q_ref[...] = q.astype(q_ref.dtype)


# ----------------------------------------------------------------------------
# Wrapper
# ----------------------------------------------------------------------------
def _round_up(x, m):
    return ((x + m - 1) // m) * m


def _resident_spec(arr, single_buffer):
    """Constant-index BlockSpec: the whole array stays VMEM-resident."""
    idx_map = lambda i: (0,) * arr.ndim
    if single_buffer and hasattr(pl, "Buffered"):
        try:  # single-buffer constant operands (saves one duplicate VMEM copy)
            return pl.BlockSpec(arr.shape, idx_map, pipeline_mode=pl.Buffered(1))
        except TypeError:
            pass
    return pl.BlockSpec(arr.shape, idx_map)


def critic_forward(state, action, packed, *, tile_b=2048):
    """TD3 Critic.forward: returns (q1, q2), each (B, 1) float32."""
    we, whs, wha, wf, bias = packed
    B, state_dim = state.shape
    action_dim = action.shape[1]
    two_f = we.shape[1]
    feature_dim = two_f // 2
    split_whs = (whs.ndim == 3)
    cdt = we.dtype

    # Single streamed input: cat([state, action], 1) in the compute dtype
    # (one DMA stream per grid step; bf16 halves the streamed HBM bytes).
    x = jnp.concatenate([state, action], axis=1).astype(cdt)

    # --- batch tile selection -------------------------------------------
    #  * multiple of 8 (sublane rule); default 2048 amortizes the ~0.35us
    #    per-grid-step pipeline overhead,
    #  * >= 2 grid steps whenever B > 8 so both v7x TensorCores get work,
    #  * no padding: grid uses cdiv, the last block may be partial (OOB rows
    #    compute garbage that is masked on store; rows are independent).
    tile_b = max(8, _round_up(int(tile_b), 8))
    if B <= 8:
        tb = B
    else:
        tb = min(tile_b, _round_up((B + 1) // 2, 8))
    grid_b = pl.cdiv(B, tb)

    # --- explicit VMEM budget ---------------------------------------------
    resident = sum(int(a.size) * a.dtype.itemsize for a in (we, whs, wha, wf, bias))
    streams = 2 * (tb * (state_dim + action_dim) * cdt.itemsize + tb * 2 * 4)
    interm = 6 * tb * two_f * 4
    need = 2 * resident + streams + interm + (4 << 20)
    vmem_limit = int(min(max(need, 32 << 20), 64 << 20))   # 64 MiB = v7x physical

    kernel = functools.partial(critic_kernel, state_dim=state_dim,
                               feature_dim=feature_dim, split_whs=split_whs)
    compiler_params = _CompilerParams(dimension_semantics=("parallel",),
                                      vmem_limit_bytes=vmem_limit)

    def build(single_buffer_weights):
        return pl.pallas_call(
            kernel,
            out_shape=jax.ShapeDtypeStruct((B, 2), jnp.float32),
            grid=(grid_b,),
            in_specs=[pl.BlockSpec((tb, state_dim + action_dim),
                                   lambda i: (i, 0))]
                     + [_resident_spec(a, single_buffer_weights)
                        for a in (we, whs, wha, wf, bias)],
            out_specs=pl.BlockSpec((tb, 2), lambda i: (i, 0)),
            compiler_params=compiler_params,
        )

    args = (x, we, whs, wha, wf, bias)
    try:
        q = build(True)(*args)
    except Exception:
        # pl.Buffered(1) single-buffering unavailable on this jax/TPU combo:
        # fall back to default double-buffered resident weights.
        q = build(False)(*args)

    return q[:, 0:1], q[:, 1:2]


# ----------------------------------------------------------------------------
# Parameter construction / packing
# ----------------------------------------------------------------------------
def init_params(key, state_dim, action_dim, feature_dim):
    """Per-branch params, (in, out) layout, biases as (1, out) — torch-like init."""
    ks = jax.random.split(key, 12)

    def lin(kw, kb, fan_in, fan_out):
        bound = 1.0 / np.sqrt(fan_in)
        w = jax.random.uniform(kw, (fan_in, fan_out), jnp.float32, -bound, bound)
        b = jax.random.uniform(kb, (1, fan_out), jnp.float32, -bound, bound)
        return w, b

    def branch(k0, k1, k2, k3, k4, k5):
        we, be = lin(k0, k1, state_dim, feature_dim)
        wh, bh = lin(k2, k3, feature_dim + action_dim, feature_dim)
        whs, wha = wh[:feature_dim], wh[feature_dim:]   # split of cat([enc, a])
        wf, bf = lin(k4, k5, feature_dim, 1)
        return (we, be, whs, wha, bh, wf, bf)

    return branch(*ks[0:6]) + branch(*ks[6:12])


def pack_params(params, weight_dtype=jnp.float32, split_whs=None):
    """Fuse both branches into 4 weight slabs + 1 bias slab.

    we   (S, 2F)     = [We1 | We2]
    whs  (2F, 2F)    = blockdiag(Whs1, Whs2)  when 2F <= 256 (single MXU dot)
         (2, F, F)   = stack(Whs1, Whs2)      otherwise (skips the zero half)
    wha  (A, 2F)     = [Wha1 | Wha2]
    wf   (2F, 2)     = blockdiag(wf1, wf2)
    bias (3, 2F) f32 = rows: encoder biases, head biases, [bf1, bf2, 0, ...]
    """
    (we1, be1, whs1, wha1, bh1, wf1, bf1,
     we2, be2, whs2, wha2, bh2, wf2, bf2) = params
    F = we1.shape[1]
    if split_whs is None:
        split_whs = (2 * F > 256)   # beyond one v6e/v7x MXU tile (use 128 on v5e)

    we = jnp.concatenate([we1, we2], axis=1).astype(weight_dtype)       # (S, 2F)
    wha = jnp.concatenate([wha1, wha2], axis=1).astype(weight_dtype)    # (A, 2F)
    if split_whs:
        whs = jnp.stack([whs1, whs2], axis=0).astype(weight_dtype)      # (2, F, F)
    else:
        zF = jnp.zeros((F, F), jnp.float32)
        whs = jnp.block([[whs1, zF], [zF, whs2]]).astype(weight_dtype)  # (2F, 2F)
    wf = jnp.block([[wf1, jnp.zeros_like(wf1)],
                    [jnp.zeros_like(wf2), wf2]]).astype(weight_dtype)   # (2F, 2)

    be = jnp.concatenate([be1, be2], axis=1)                            # (1, 2F)
    bh = jnp.concatenate([bh1, bh2], axis=1)                            # (1, 2F)
    bf = jnp.pad(jnp.concatenate([bf1, bf2], axis=1),
                 ((0, 0), (0, 2 * F - 2)))                              # (1, 2F)
    bias = jnp.concatenate([be, bh, bf], axis=0).astype(jnp.float32)    # (3, 2F)
    return we, whs, wha, wf, bias


def reference_forward(state, action, params):
    """Pure-JAX reference of the original (unfused) module math, full-f32 dots."""
    hi = jax.lax.Precision.HIGHEST

    def branch(p):
        we, be, whs, wha, bh, wf, bf = p
        enc = jnp.maximum(jnp.dot(state, we, precision=hi) + be, 0.0)
        h = jnp.maximum(jnp.dot(enc, whs, precision=hi)
                        + jnp.dot(action, wha, precision=hi) + bh, 0.0)
        return jnp.dot(h, wf, precision=hi) + bf

    return branch(params[0:7]), branch(params[7:14])


# ----------------------------------------------------------------------------
# Test
# ----------------------------------------------------------------------------
if __name__ == "__main__":
    B, STATE_DIM, ACTION_DIM, FEATURE_DIM = 8, 16, 8, 32

    key = jax.random.PRNGKey(0)
    k_state, k_action, k_params, k_rest = jax.random.split(key, 4)

    state = jax.random.normal(k_state, (B, STATE_DIM), jnp.float32)
    action = jax.random.normal(k_action, (B, ACTION_DIM), jnp.float32)
    params = init_params(k_params, STATE_DIM, ACTION_DIM, FEATURE_DIM)
    packed = pack_params(params)                      # f32, block-diag whs

    # TPU f32 matmuls may run at reduced (bf16-pass) precision depending on
    # generation / precision flags; tolerance covers that while still catching
    # any structural error (values change by O(0.1-1) if the math is wrong).
    TOL = dict(rtol=2e-2, atol=2e-2)

    # 1) small batch: single grid step
    q1, q2 = critic_forward(state, action, packed)
    jax.block_until_ready((q1, q2))
    r1, r2 = reference_forward(state, action, params)
    assert q1.shape == (B, 1) and q2.shape == (B, 1)
    np.testing.assert_allclose(np.asarray(q1), np.asarray(r1), **TOL)
    np.testing.assert_allclose(np.asarray(q2), np.asarray(r2), **TOL)

    # 2) larger ragged batch: multi-step grid + partial last block (no padding)
    BB = 200
    k_sb, k_ab, k_p2, k_s2, k_a2 = jax.random.split(k_rest, 5)
    state_b = jax.random.normal(k_sb, (BB, STATE_DIM), jnp.float32)
    action_b = jax.random.normal(k_ab, (BB, ACTION_DIM), jnp.float32)
    qb1, qb2 = critic_forward(state_b, action_b, packed, tile_b=64)
    jax.block_until_ready((qb1, qb2))
    rb1, rb2 = reference_forward(state_b, action_b, params)
    np.testing.assert_allclose(np.asarray(qb1), np.asarray(rb1), **TOL)
    np.testing.assert_allclose(np.asarray(qb2), np.asarray(rb2), **TOL)

    # 3) bf16 streamed activations + weights (f32 accumulation in-kernel)
    packed_bf16 = pack_params(params, weight_dtype=jnp.bfloat16)
    qh1, qh2 = critic_forward(state_b, action_b, packed_bf16)
    jax.block_until_ready((qh1, qh2))
    params_bf16 = tuple(p.astype(jnp.bfloat16).astype(jnp.float32) for p in params)
    hb1, hb2 = reference_forward(
        state_b.astype(jnp.bfloat16).astype(jnp.float32),
        action_b.astype(jnp.bfloat16).astype(jnp.float32), params_bf16)
    np.testing.assert_allclose(np.asarray(qh1), np.asarray(hb1), rtol=5e-2, atol=5e-2)
    np.testing.assert_allclose(np.asarray(qh2), np.asarray(hb2), rtol=5e-2, atol=5e-2)

    # 4) larger feature dim: exercises the split-whs (2F > 256) path
    F_BIG, B2 = 256, 64
    params_big = init_params(k_p2, STATE_DIM, ACTION_DIM, F_BIG)
    packed_big = pack_params(params_big)
    assert packed_big[1].ndim == 3                    # per-branch whs slabs
    state2 = jax.random.normal(k_s2, (B2, STATE_DIM), jnp.float32)
    action2 = jax.random.normal(k_a2, (B2, ACTION_DIM), jnp.float32)
    qs1, qs2 = critic_forward(state2, action2, packed_big)
    jax.block_until_ready((qs1, qs2))
    rs1, rs2 = reference_forward(state2, action2, params_big)
    np.testing.assert_allclose(np.asarray(qs1), np.asarray(rs1), **TOL)
    np.testing.assert_allclose(np.asarray(qs2), np.asarray(rs2), **TOL)

    print("KERNEL_OK")
</pallas_src>

<mosaic_0001>
module attributes {stable_mosaic.version = 11 : i64} {
  func.func @critic_kernel(%arg0: i32, %arg1: memref<8x24xf32, #tpu.memory_space<vmem>>, %arg2: memref<16x64xf32, #tpu.memory_space<vmem>>, %arg3: memref<64x64xf32, #tpu.memory_space<vmem>>, %arg4: memref<8x64xf32, #tpu.memory_space<vmem>>, %arg5: memref<64x2xf32, #tpu.memory_space<vmem>>, %arg6: memref<3x64xf32, #tpu.memory_space<vmem>>, %arg7: memref<8x2xf32, #tpu.memory_space<vmem>>) attributes {dimension_semantics = [#tpu.dimension_semantics<parallel>], iteration_bounds = array<i64: 1>, scalar_prefetch = 0 : i64, scratch_operands = 0 : i64, tpu.core_type = #tpu.core_type<tc>, window_params = [{transform_indices = @transform_0, window_bounds = array<i64: 8, 24>}, {pipeline_mode = #tpu.pipeline_mode<synchronous>, transform_indices = @transform_1, window_bounds = array<i64: 16, 64>}, {pipeline_mode = #tpu.pipeline_mode<synchronous>, transform_indices = @transform_2, window_bounds = array<i64: 64, 64>}, {pipeline_mode = #tpu.pipeline_mode<synchronous>, transform_indices = @transform_3, window_bounds = array<i64: 8, 64>}, {pipeline_mode = #tpu.pipeline_mode<synchronous>, transform_indices = @transform_4, window_bounds = array<i64: 64, 2>}, {pipeline_mode = #tpu.pipeline_mode<synchronous>, transform_indices = @transform_5, window_bounds = array<i64: 3, 64>}, {transform_indices = @transform_6, window_bounds = array<i64: 8, 2>}]} {
    %c0 = arith.constant 0 : index
    %c0_0 = arith.constant 0 : index
    %0 = vector.load %arg1[%c0, %c0_0] : memref<8x24xf32, #tpu.memory_space<vmem>>, vector<8x16xf32>
    %c0_1 = arith.constant 0 : index
    %c16 = arith.constant 16 : index
    %1 = vector.load %arg1[%c0_1, %c16] : memref<8x24xf32, #tpu.memory_space<vmem>>, vector<8x8xf32>
    %c0_2 = arith.constant 0 : index
    %c0_3 = arith.constant 0 : index
    %2 = vector.load %arg6[%c0_2, %c0_3] : memref<3x64xf32, #tpu.memory_space<vmem>>, vector<1x64xf32>
    %c1 = arith.constant 1 : index
    %c0_4 = arith.constant 0 : index
    %3 = vector.load %arg6[%c1, %c0_4] : memref<3x64xf32, #tpu.memory_space<vmem>>, vector<1x64xf32>
    %c2 = arith.constant 2 : index
    %c0_5 = arith.constant 0 : index
    %4 = vector.load %arg6[%c2, %c0_5] : memref<3x64xf32, #tpu.memory_space<vmem>>, vector<1x2xf32>
    %c0_6 = arith.constant 0 : index
    %c0_7 = arith.constant 0 : index
    %5 = vector.load %arg2[%c0_6, %c0_7] : memref<16x64xf32, #tpu.memory_space<vmem>>, vector<16x64xf32>
    %cst = arith.constant dense<0.000000e+00> : vector<8x64xf32>
    %6 = tpu.matmul %0, %5, %cst {dimension_numbers = #tpu.dot_dimension_numbers<[1], [0], [0], [1], [0, 0, 1, 1], [], []>} : vector<8x16xf32>, vector<16x64xf32>, vector<8x64xf32> -> vector<8x64xf32>
    %7 = vector.broadcast %2 : vector<1x64xf32> to vector<8x64xf32>
    %8 = arith.addf %6, %7 : vector<8x64xf32>
    %cst_8 = arith.constant 0.000000e+00 : f32
    %9 = vector.broadcast %cst_8 : f32 to vector<8x64xf32>
    %10 = arith.maximumf %8, %9 : vector<8x64xf32>
    %c0_9 = arith.constant 0 : index
    %c0_10 = arith.constant 0 : index
    %11 = vector.load %arg3[%c0_9, %c0_10] : memref<64x64xf32, #tpu.memory_space<vmem>>, vector<64x64xf32>
    %cst_11 = arith.constant dense<0.000000e+00> : vector<8x64xf32>
    %12 = tpu.matmul %10, %11, %cst_11 {dimension_numbers = #tpu.dot_dimension_numbers<[1], [0], [0], [1], [0, 0, 1, 1], [], []>} : vector<8x64xf32>, vector<64x64xf32>, vector<8x64xf32> -> vector<8x64xf32>
    %c0_12 = arith.constant 0 : index
    %c0_13 = arith.constant 0 : index
    %13 = vector.load %arg4[%c0_12, %c0_13] : memref<8x64xf32, #tpu.memory_space<vmem>>, vector<8x64xf32>
    %cst_14 = arith.constant dense<0.000000e+00> : vector<8x64xf32>
    %14 = tpu.matmul %1, %13, %cst_14 {dimension_numbers = #tpu.dot_dimension_numbers<[1], [0], [0], [1], [0, 0, 1, 1], [], []>} : vector<8x8xf32>, vector<8x64xf32>, vector<8x64xf32> -> vector<8x64xf32>
    %15 = arith.addf %12, %14 : vector<8x64xf32>
    %16 = vector.broadcast %3 : vector<1x64xf32> to vector<8x64xf32>
    %17 = arith.addf %15, %16 : vector<8x64xf32>
    %cst_15 = arith.constant 0.000000e+00 : f32
    %18 = vector.broadcast %cst_15 : f32 to vector<8x64xf32>
    %19 = arith.maximumf %17, %18 : vector<8x64xf32>
    %c0_16 = arith.constant 0 : index
    %c0_17 = arith.constant 0 : index
    %20 = vector.load %arg5[%c0_16, %c0_17] : memref<64x2xf32, #tpu.memory_space<vmem>>, vector<64x2xf32>
    %cst_18 = arith.constant dense<0.000000e+00> : vector<8x2xf32>
    %21 = tpu.matmul %19, %20, %cst_18 {dimension_numbers = #tpu.dot_dimension_numbers<[1], [0], [0], [1], [0, 0, 1, 1], [], []>} : vector<8x64xf32>, vector<64x2xf32>, vector<8x2xf32> -> vector<8x2xf32>
    %22 = vector.broadcast %4 : vector<1x2xf32> to vector<8x2xf32>
    %23 = arith.addf %21, %22 : vector<8x2xf32>
    %c0_19 = arith.constant 0 : index
    %c0_20 = arith.constant 0 : index
    %24 = vector.load %arg7[%c0_19, %c0_20] : memref<8x2xf32, #tpu.memory_space<vmem>>, vector<8x2xf32>
    tpu.vector_store %arg7[%c0_19, %c0_20], %23 {strides = array<i32>} : memref<8x2xf32, #tpu.memory_space<vmem>>, vector<8x2xf32>,
    return
  }
  func.func @transform_0(%arg0: i32) -> (i32, i32) {
    %c0_i32 = arith.constant 0 : i32
    %c0_i32_0 = arith.constant 0 : i32
    return %arg0, %c0_i32 : i32, i32
  }
  func.func @transform_1(%arg0: i32) -> (i32, i32) {
    %c0_i32 = arith.constant 0 : i32
    %c0_i32_0 = arith.constant 0 : i32
    %c0_i32_1 = arith.constant 0 : i32
    return %c0_i32, %c0_i32_0 : i32, i32
  }
  func.func @transform_2(%arg0: i32) -> (i32, i32) {
    %c0_i32 = arith.constant 0 : i32
    %c0_i32_0 = arith.constant 0 : i32
    %c0_i32_1 = arith.constant 0 : i32
    return %c0_i32, %c0_i32_0 : i32, i32
  }
  func.func @transform_3(%arg0: i32) -> (i32, i32) {
    %c0_i32 = arith.constant 0 : i32
    %c0_i32_0 = arith.constant 0 : i32
    %c0_i32_1 = arith.constant 0 : i32
    return %c0_i32, %c0_i32_0 : i32, i32
  }
  func.func @transform_4(%arg0: i32) -> (i32, i32) {
    %c0_i32 = arith.constant 0 : i32
    %c0_i32_0 = arith.constant 0 : i32
    %c0_i32_1 = arith.constant 0 : i32
    return %c0_i32, %c0_i32_0 : i32, i32
  }
  func.func @transform_5(%arg0: i32) -> (i32, i32) {
    %c0_i32 = arith.constant 0 : i32
    %c0_i32_0 = arith.constant 0 : i32
    %c0_i32_1 = arith.constant 0 : i32
    return %c0_i32, %c0_i32_0 : i32, i32
  }
  func.func @transform_6(%arg0: i32) -> (i32, i32) {
    %c0_i32 = arith.constant 0 : i32
    %c0_i32_0 = arith.constant 0 : i32
    return %arg0, %c0_i32 : i32, i32
  }
}

module attributes {stable_mosaic.version = 11 : i64} {
  func.func @critic_kernel(%arg0: i32, %arg1: memref<8x24xf32, #tpu.memory_space<vmem>>, %arg2: memref<16x64xf32, #tpu.memory_space<vmem>>, %arg3: memref<64x64xf32, #tpu.memory_space<vmem>>, %arg4: memref<8x64xf32, #tpu.memory_space<vmem>>, %arg5: memref<64x2xf32, #tpu.memory_space<vmem>>, %arg6: memref<3x64xf32, #tpu.memory_space<vmem>>, %arg7: memref<8x2xf32, #tpu.memory_space<vmem>>) attributes {dimension_semantics = [#tpu.dimension_semantics<parallel>], iteration_bounds = array<i64: 1>, scalar_prefetch = 0 : i64, scratch_operands = 0 : i64, tpu.core_type = #tpu.core_type<tc>, window_params = [{transform_indices = @transform_0, window_bounds = array<i64: 8, 24>}, {pipeline_mode = #tpu.pipeline_mode<synchronous>, transform_indices = @transform_1, window_bounds = array<i64: 16, 64>}, {pipeline_mode = #tpu.pipeline_mode<synchronous>, transform_indices = @transform_2, window_bounds = array<i64: 64, 64>}, {pipeline_mode = #tpu.pipeline_mode<synchronous>, transform_indices = @transform_3, window_bounds = array<i64: 8, 64>}, {pipeline_mode = #tpu.pipeline_mode<synchronous>, transform_indices = @transform_4, window_bounds = array<i64: 64, 2>}, {pipeline_mode = #tpu.pipeline_mode<synchronous>, transform_indices = @transform_5, window_bounds = array<i64: 3, 64>}, {transform_indices = @transform_6, window_bounds = array<i64: 8, 2>}]} {
    %c0 = arith.constant 0 : index
    %c0_0 = arith.constant 0 : index
    %0 = vector.load %arg1[%c0, %c0_0] : memref<8x24xf32, #tpu.memory_space<vmem>>, vector<8x16xf32>
    %c0_1 = arith.constant 0 : index
    %c16 = arith.constant 16 : index
    %1 = vector.load %arg1[%c0_1, %c16] : memref<8x24xf32, #tpu.memory_space<vmem>>, vector<8x8xf32>
    %c0_2 = arith.constant 0 : index
    %c0_3 = arith.constant 0 : index
    %2 = vector.load %arg6[%c0_2, %c0_3] : memref<3x64xf32, #tpu.memory_space<vmem>>, vector<1x64xf32>
    %c1 = arith.constant 1 : index
    %c0_4 = arith.constant 0 : index
    %3 = vector.load %arg6[%c1, %c0_4] : memref<3x64xf32, #tpu.memory_space<vmem>>, vector<1x64xf32>
    %c2 = arith.constant 2 : index
    %c0_5 = arith.constant 0 : index
    %4 = vector.load %arg6[%c2, %c0_5] : memref<3x64xf32, #tpu.memory_space<vmem>>, vector<1x2xf32>
    %c0_6 = arith.constant 0 : index
    %c0_7 = arith.constant 0 : index
    %5 = vector.load %arg2[%c0_6, %c0_7] : memref<16x64xf32, #tpu.memory_space<vmem>>, vector<16x64xf32>
    %cst = arith.constant dense<0.000000e+00> : vector<8x64xf32>
    %6 = tpu.matmul %0, %5, %cst {dimension_numbers = #tpu.dot_dimension_numbers<[1], [0], [0], [1], [0, 0, 1, 1], [], []>} : vector<8x16xf32>, vector<16x64xf32>, vector<8x64xf32> -> vector<8x64xf32>
    %7 = vector.broadcast %2 : vector<1x64xf32> to vector<8x64xf32>
    %8 = arith.addf %6, %7 : vector<8x64xf32>
    %cst_8 = arith.constant 0.000000e+00 : f32
    %9 = vector.broadcast %cst_8 : f32 to vector<8x64xf32>
    %10 = arith.maximumf %8, %9 : vector<8x64xf32>
    %c0_9 = arith.constant 0 : index
    %c0_10 = arith.constant 0 : index
    %11 = vector.load %arg3[%c0_9, %c0_10] : memref<64x64xf32, #tpu.memory_space<vmem>>, vector<64x64xf32>
    %cst_11 = arith.constant dense<0.000000e+00> : vector<8x64xf32>
    %12 = tpu.matmul %10, %11, %cst_11 {dimension_numbers = #tpu.dot_dimension_numbers<[1], [0], [0], [1], [0, 0, 1, 1], [], []>} : vector<8x64xf32>, vector<64x64xf32>, vector<8x64xf32> -> vector<8x64xf32>
    %c0_12 = arith.constant 0 : index
    %c0_13 = arith.constant 0 : index
    %13 = vector.load %arg4[%c0_12, %c0_13] : memref<8x64xf32, #tpu.memory_space<vmem>>, vector<8x64xf32>
    %cst_14 = arith.constant dense<0.000000e+00> : vector<8x64xf32>
    %14 = tpu.matmul %1, %13, %cst_14 {dimension_numbers = #tpu.dot_dimension_numbers<[1], [0], [0], [1], [0, 0, 1, 1], [], []>} : vector<8x8xf32>, vector<8x64xf32>, vector<8x64xf32> -> vector<8x64xf32>
    %15 = arith.addf %12, %14 : vector<8x64xf32>
    %16 = vector.broadcast %3 : vector<1x64xf32> to vector<8x64xf32>
    %17 = arith.addf %15, %16 : vector<8x64xf32>
    %cst_15 = arith.constant 0.000000e+00 : f32
    %18 = vector.broadcast %cst_15 : f32 to vector<8x64xf32>
    %19 = arith.maximumf %17, %18 : vector<8x64xf32>
    %c0_16 = arith.constant 0 : index
    %c0_17 = arith.constant 0 : index
    %20 = vector.load %arg5[%c0_16, %c0_17] : memref<64x2xf32, #tpu.memory_space<vmem>>, vector<64x2xf32>
    %cst_18 = arith.constant dense<0.000000e+00> : vector<8x2xf32>
    %21 = tpu.matmul %19, %20, %cst_18 {dimension_numbers = #tpu.dot_dimension_numbers<[1], [0], [0], [1], [0, 0, 1, 1], [], []>} : vector<8x64xf32>, vector<64x2xf32>, vector<8x2xf32> -> vector<8x2xf32>
    %22 = vector.broadcast %4 : vector<1x2xf32> to vector<8x2xf32>
    %23 = arith.addf %21, %22 : vector<8x2xf32>
    %c0_19 = arith.constant 0 : index
    %c0_20 = arith.constant 0 : index
    %24 = vector.load %arg7[%c0_19, %c0_20] : memref<8x2xf32, #tpu.memory_space<vmem>>, vector<8x2xf32>
    tpu.vector_store %arg7[%c0_19, %c0_20], %23 {strides = array<i32>} : memref<8x2xf32, #tpu.memory_space<vmem>>, vector<8x2xf32>,
    return
  }
  func.func @transform_0(%arg0: i32) -> (i32, i32) {
    %c0_i32 = arith.constant 0 : i32
    %c0_i32_0 = arith.constant 0 : i32
    return %arg0, %c0_i32 : i32, i32
  }
  func.func @transform_1(%arg0: i32) -> (i32, i32) {
    %c0_i32 = arith.constant 0 : i32
    %c0_i32_0 = arith.constant 0 : i32
    %c0_i32_1 = arith.constant 0 : i32
    return %c0_i32, %c0_i32_0 : i32, i32
  }
  func.func @transform_2(%arg0: i32) -> (i32, i32) {
    %c0_i32 = arith.constant 0 : i32
    %c0_i32_0 = arith.constant 0 : i32
    %c0_i32_1 = arith.constant 0 : i32
    return %c0_i32, %c0_i32_0 : i32, i32
  }
  func.func @transform_3(%arg0: i32) -> (i32, i32) {
    %c0_i32 = arith.constant 0 : i32
    %c0_i32_0 = arith.constant 0 : i32
    %c0_i32_1 = arith.constant 0 : i32
    return %c0_i32, %c0_i32_0 : i32, i32
  }
  func.func @transform_4(%arg0: i32) -> (i32, i32) {
    %c0_i32 = arith.constant 0 : i32
    %c0_i32_0 = arith.constant 0 : i32
    %c0_i32_1 = arith.constant 0 : i32
    return %c0_i32, %c0_i32_0 : i32, i32
  }
  func.func @transform_5(%arg0: i32) -> (i32, i32) {
    %c0_i32 = arith.constant 0 : i32
    %c0_i32_0 = arith.constant 0 : i32
    %c0_i32_1 = arith.constant 0 : i32
    return %c0_i32, %c0_i32_0 : i32, i32
  }
  func.func @transform_6(%arg0: i32) -> (i32, i32) {
    %c0_i32 = arith.constant 0 : i32
    %c0_i32_0 = arith.constant 0 : i32
    return %arg0, %c0_i32 : i32, i32
  }
}

</mosaic_0001>

<bundles_post_ra>
// kernel: tpu_custom_call.1
= control target key start
LH: loop header
LB: loop body
LE: loop exit
PB: predicated region body
PF: predicated region fallthrough
CT: control target
= control target key end

     0   :  { %11 = vsyncpa [#allocation3], 0  ;;  %s437_s0 = inlined_call_operand.hbm [shape: f32[8,24], index: 0, kind: input, shape index: {}]   ;;  %s438_s1 = inlined_call_operand.hbm [shape: f32[16,64], index: 1, kind: input, shape index: {}]   ;;  %s439_s2 = inlined_call_operand.vmem [shape: f32[64,64], index: 2, kind: input, shape index: {}]   ;;  %s440_s3 = inlined_call_operand.hbm [shape: f32[8,64], index: 3, kind: input, shape index: {}]   ;;  %s441_s4 = inlined_call_operand.vmem [shape: f32[64,2], index: 4, kind: input, shape index: {}]   ;;  %s442_s5 = inlined_call_operand.hbm [shape: f32[3,64], index: 5, kind: input, shape index: {}]   ;;  %s443_s6 = inlined_call_operand.vmem [shape: f32[8,2], index: 6, kind: output, shape index: {}]  }
   0x1   :  { %12 = vsyncpa [#allocation5], 0  ;;  %s29_s23 = sshll.u32 %s438_s1, 4  ;;  %s30_s23 = int_to_ptr.hbm [resolvable:$true] %s29_s23 }
   0x2   :  { %13 = vsyncpa [#allocation8], 0  ;;  %s330_s24 = smov [#allocation4]   ;;  %s19_s28 = sshll.u32 %s437_s0, 4  ;;  %s20_s28 = int_to_ptr.hbm [resolvable:$true] %s19_s28 }
   0x3   :  { %s31_s25 = sshll.u32 %s330_s24, 4  ;;  %s331_s29 = smov 128   ;;  %s32_s25 = int_to_ptr.vmem [resolvable:$true] %s31_s25 }
   0x4   :  { %s332_s30 = smov 8   ;;  %s333_s7 = smov [#allocation2]  }
   0x5   :  { %37 = dma.hbm_to_vmem [thread:$0]  %s30_s23, 256, %s32_s25, [#allocation5], %s331_s29, %s331_s29, %s332_s30  }
   0x6   :  { %s21_s8 = sshll.u32 %s333_s7, 4  ;;  %s45_s11 = sshll.u32 %s440_s3, 4  ;;  %s22_s8 = int_to_ptr.vmem [resolvable:$true] %s21_s8  ;;  %s46_s11 = int_to_ptr.hbm [resolvable:$true] %s45_s11 }
   0x7   :  { %24 = dma.hbm_to_vmem [thread:$0]  %s20_s28, 128, %s22_s8, [#allocation3]  }
   0x8   :  { %s58_s13 = sshll.u32 %s442_s5, 4  ;;  %s334_s14 = smov [#allocation6]   ;;  %s59_s13 = int_to_ptr.hbm [resolvable:$true] %s58_s13 }
   0x9   :  { %s47_s15 = sshll.u32 %s334_s14, 4  ;;  %s335_s0 = smov [#allocation7]   ;;  %s48_s15 = int_to_ptr.vmem [resolvable:$true] %s47_s15 }
   0xa   :  { %50 = dma.hbm_to_vmem [thread:$0]  %s46_s11, 128, %s48_s15, [#allocation5]  }
   0xb   :  { %s60_s16 = sshll.u32 %s335_s0, 4  ;;  %s61_s16 = int_to_ptr.vmem [resolvable:$true] %s60_s16 }
   0xc   :  { %63 = dma.hbm_to_vmem [thread:$0]  %s59_s13, 64, %s61_s16, [#allocation8]  }
   0xd   :  { %324 = dma.done.wait [#allocation3], 128  }
   0xe   :  { %325 = vsyncadd [#allocation3], 4294967168 }
   0xf   :  { %326 = dma.done.wait [#allocation5], 384  }
  0x10   :  { %327 = vsyncadd [#allocation5], 4294966912 }
  0x11   :  { %328 = dma.done.wait [#allocation8], 64  }
  0x12   :  { %329 = vsyncadd [#allocation8], 4294967232  ;;  %v85_v0 = vld [vmem:[#allocation4 + $0x8] sm:$0xff]  ;;  %v84_v1 = vld [vmem:[#allocation4] sm:$0xff]  ;;  %vm87_vm0 = vcmask 130048   ;;  %s336_s3 = smov 112  }
  0x13   :  { %v80_v2 = vld [vmem:[#allocation2] sm:$0xff]  ;;  %105 = vmatpush.msra.mxu0 %v85_v0  ;;  %v119_v3 = vld [vmem:[%s439_s2 + $0x38] sm:$0xff]  ;;  %v118_v4 = vld [vmem:[%s439_s2 + $0x30] sm:$0xff]  ;;  %vm123_vm1 = vcmask 64512   ;;  %vm146_vm2 = vcmask 523264   ;;  %vm205_vm3 = vcmask 15360  }
  0x14   :  { %121 = vrot.lane.b32.xlu0 %v80_v2, %s336_s3  ;;  %158 = vmatpush.msra.mxu2 %v119_v3  ;;  %v117_v5 = vld [vmem:[%s439_s2 + $0x28] sm:$0xff]  ;;  %v116_v6 = vld [vmem:[%s439_s2 + $0x20] sm:$0xff]  ;;  %v115_v7 = vld [vmem:[%s439_s2 + $0x18] sm:$0xff] }
  0x15   :  { %106 = vmatpush.msra.mxu0 %v84_v1  ;;  %v114_v8 = vld [vmem:[%s439_s2 + $0x10] sm:$0xff]  ;;  %v113_v9 = vld [vmem:[%s439_s2 + $0x8] sm:$0xff]  ;;  %v112_v10 = vld [vmem:[%s439_s2] sm:$0xff] }
  0x16   :  { %214 = vmatmul.msk.f32.vlgmr.msra.gmra.mxu0 %vm87_vm0, %v80_v2  ;;  %159 = vmatpush.msra.mxu2 %v118_v4  ;;  %v120_v11 = vld [vmem:[#allocation6] sm:$0xff]  ;;  %v179_v13 = vld [vmem:[%s441_s4 + $0x30] sm:$0xff]  ;;  %v178_v14 = vld [vmem:[%s441_s4 + $0x28] sm:$0xff] }
  0x17   :  { %v180_v12 = vld [vmem:[%s441_s4 + $0x38] sm:$0xff]  ;;  %141 = vmatpush.msra.mxu1 %v120_v11  ;;  %v177_v15 = vld [vmem:[%s441_s4 + $0x20] sm:$0xff]  ;;  %v175_v22 = vld [vmem:[%s441_s4 + $0x10] sm:$0xff] }
  0x18   :  { %160 = vmatpush.msra.mxu2 %v117_v5  ;;  %193 = vmatpush.msra.mxu3 %v180_v12  ;;  %v225_v17 = vld [vmem:[#allocation7] ss:$0 sm:$0xff]  ;;  %v176_v21 = vld [vmem:[%s441_s4 + $0x18] sm:$0xff]  ;;  %v174_v23 = vld [vmem:[%s441_s4 + $0x8] sm:$0xff] }
  0x19   :  { %v173_v24 = vld [vmem:[%s441_s4] sm:$0xff] }
  0x1a   :  { %161 = vmatpush.msra.mxu2 %v116_v6  ;;  %194 = vmatpush.msra.mxu3 %v179_v13  ;;  %v226_v26 = vld [vmem:[#allocation7 + $0x1] ss:$0 sm:$0xff]  ;;  %v227_v31 = vld [vmem:[#allocation7 + $0x2] ss:$0 sm:$0xff] }
  0x1c   :  { %162 = vmatpush.msra.mxu2 %v115_v7  ;;  %195 = vmatpush.msra.mxu3 %v178_v14 }
  0x1e   :  { %163 = vmatpush.msra.mxu2 %v114_v8  ;;  %196 = vmatpush.msra.mxu3 %v177_v15 }
  0x20   :  { %164 = vmatpush.msra.mxu2 %v113_v9  ;;  %197 = vmatpush.msra.mxu3 %v176_v21 }
  0x22   :  { %165 = vmatpush.msra.mxu2 %v112_v10  ;;  %198 = vmatpush.msra.mxu3 %v175_v22 }
  0x24   :  { %199 = vmatpush.msra.mxu3 %v174_v23 }
  0x26   :  { %200 = vmatpush.msra.mxu3 %v173_v24 }
  0x86   :  { %v122_v16 = vpop.permute.xlu0 %121 }
  0x87   :  { %215 = vmatmul.msk.f32.vlgmr.msra.gmra.mxu1 %vm123_vm1, %v122_v16 }
  0x93   :  { %v108_v18 = vpop.f32.mrf.mxu0 }
  0x94   :  { %v109_v19 = vadd.f32 %v225_v17, %v108_v18 }
  0x96   :  { %v111_v20 = vmax.f32 %v109_v19, 0.0 }
  0x98   :  { %216 = vmatmul.msk.f32.vlgmr.msra.gmra.mxu2 %vm146_vm2, %v111_v20 }
 0x104   :  { %v143_v25 = vpop.f32.mrf.mxu1 }
 0x11b   :  { %v167_v27 = vpop.f32.mrf.mxu2 }
 0x11c   :  { %v168_v28 = vadd.f32 %v167_v27, %v143_v25 }
 0x11e   :  { %v171_v29 = vadd.f32 %v226_v26, %v168_v28 }
 0x120   :  { %v172_v30 = vmax.f32 %v171_v29, 0.0 }
 0x122   :  { %217 = vmatmul.msk.f32.vlgmr.msra.gmra.mxu3 %vm146_vm2, %v172_v30 }
 0x1a5   :  { %v202_v32 = vpop.f32.mrf.mxu3 }
 0x1a6   :  { %v203_v33 = vadd.f32 %v227_v31, %v202_v32 }
 0x1a8   :  { %206 = vst.msk [vmem:[%s443_s6] sm:$0xff] %vm205_vm3, %v203_v33 }
 0x1a9   :  { %211 = vsyncpa [#allocation3], 1 }
 0x1aa   :  { %212 = vsyncpa [#allocation5], 1 }
 0x1ab   :  { %213 = vsyncpa [#allocation8], 1 }

// kernel: tpu_custom_call.1
= control target key start
LH: loop header
LB: loop body
LE: loop exit
PB: predicated region body
PF: predicated region fallthrough
CT: control target
= control target key end

     0   :  { %11 = vsyncpa [#allocation3], 0  ;;  %s437_s0 = inlined_call_operand.hbm [shape: f32[8,24], index: 0, kind: input, shape index: {}]   ;;  %s438_s1 = inlined_call_operand.hbm [shape: f32[16,64], index: 1, kind: input, shape index: {}]   ;;  %s439_s2 = inlined_call_operand.vmem [shape: f32[64,64], index: 2, kind: input, shape index: {}]   ;;  %s440_s3 = inlined_call_operand.hbm [shape: f32[8,64], index: 3, kind: input, shape index: {}]   ;;  %s441_s4 = inlined_call_operand.vmem [shape: f32[64,2], index: 4, kind: input, shape index: {}]   ;;  %s442_s5 = inlined_call_operand.hbm [shape: f32[3,64], index: 5, kind: input, shape index: {}]   ;;  %s443_s6 = inlined_call_operand.vmem [shape: f32[8,2], index: 6, kind: output, shape index: {}]  }
   0x1   :  { %12 = vsyncpa [#allocation5], 0  ;;  %s29_s23 = sshll.u32 %s438_s1, 4  ;;  %s30_s23 = int_to_ptr.hbm [resolvable:$true] %s29_s23 }
   0x2   :  { %13 = vsyncpa [#allocation8], 0  ;;  %s330_s24 = smov [#allocation4]   ;;  %s19_s28 = sshll.u32 %s437_s0, 4  ;;  %s20_s28 = int_to_ptr.hbm [resolvable:$true] %s19_s28 }
   0x3   :  { %s31_s25 = sshll.u32 %s330_s24, 4  ;;  %s331_s29 = smov 128   ;;  %s32_s25 = int_to_ptr.vmem [resolvable:$true] %s31_s25 }
   0x4   :  { %s332_s30 = smov 8   ;;  %s333_s7 = smov [#allocation2]  }
   0x5   :  { %37 = dma.hbm_to_vmem [thread:$0]  %s30_s23, 256, %s32_s25, [#allocation5], %s331_s29, %s331_s29, %s332_s30  }
   0x6   :  { %s21_s8 = sshll.u32 %s333_s7, 4  ;;  %s45_s11 = sshll.u32 %s440_s3, 4  ;;  %s22_s8 = int_to_ptr.vmem [resolvable:$true] %s21_s8  ;;  %s46_s11 = int_to_ptr.hbm [resolvable:$true] %s45_s11 }
   0x7   :  { %24 = dma.hbm_to_vmem [thread:$0]  %s20_s28, 128, %s22_s8, [#allocation3]  }
   0x8   :  { %s58_s13 = sshll.u32 %s442_s5, 4  ;;  %s334_s14 = smov [#allocation6]   ;;  %s59_s13 = int_to_ptr.hbm [resolvable:$true] %s58_s13 }
   0x9   :  { %s47_s15 = sshll.u32 %s334_s14, 4  ;;  %s335_s0 = smov [#allocation7]   ;;  %s48_s15 = int_to_ptr.vmem [resolvable:$true] %s47_s15 }
   0xa   :  { %50 = dma.hbm_to_vmem [thread:$0]  %s46_s11, 128, %s48_s15, [#allocation5]  }
   0xb   :  { %s60_s16 = sshll.u32 %s335_s0, 4  ;;  %s61_s16 = int_to_ptr.vmem [resolvable:$true] %s60_s16 }
   0xc   :  { %63 = dma.hbm_to_vmem [thread:$0]  %s59_s13, 64, %s61_s16, [#allocation8]  }
   0xd   :  { %324 = dma.done.wait [#allocation3], 128  }
   0xe   :  { %325 = vsyncadd [#allocation3], 4294967168 }
   0xf   :  { %326 = dma.done.wait [#allocation5], 384  }
  0x10   :  { %327 = vsyncadd [#allocation5], 4294966912 }
  0x11   :  { %328 = dma.done.wait [#allocation8], 64  }
  0x12   :  { %329 = vsyncadd [#allocation8], 4294967232  ;;  %v85_v0 = vld [vmem:[#allocation4 + $0x8] sm:$0xff]  ;;  %v84_v1 = vld [vmem:[#allocation4] sm:$0xff]  ;;  %vm87_vm0 = vcmask 130048   ;;  %s336_s3 = smov 112  }
  0x13   :  { %v80_v2 = vld [vmem:[#allocation2] sm:$0xff]  ;;  %105 = vmatpush.msra.mxu0 %v85_v0  ;;  %v119_v3 = vld [vmem:[%s439_s2 + $0x38] sm:$0xff]  ;;  %v118_v4 = vld [vmem:[%s439_s2 + $0x30] sm:$0xff]  ;;  %vm123_vm1 = vcmask 64512   ;;  %vm146_vm2 = vcmask 523264   ;;  %vm205_vm3 = vcmask 15360  }
  0x14   :  { %121 = vrot.lane.b32.xlu0 %v80_v2, %s336_s3  ;;  %158 = vmatpush.msra.mxu2 %v119_v3  ;;  %v117_v5 = vld [vmem:[%s439_s2 + $0x28] sm:$0xff]  ;;  %v116_v6 = vld [vmem:[%s439_s2 + $0x20] sm:$0xff]  ;;  %v115_v7 = vld [vmem:[%s439_s2 + $0x18] sm:$0xff] }
  0x15   :  { %106 = vmatpush.msra.mxu0 %v84_v1  ;;  %v114_v8 = vld [vmem:[%s439_s2 + $0x10] sm:$0xff]  ;;  %v113_v9 = vld [vmem:[%s439_s2 + $0x8] sm:$0xff]  ;;  %v112_v10 = vld [vmem:[%s439_s2] sm:$0xff] }
  0x16   :  { %214 = vmatmul.msk.f32.vlgmr.msra.gmra.mxu0 %vm87_vm0, %v80_v2  ;;  %159 = vmatpush.msra.mxu2 %v118_v4  ;;  %v120_v11 = vld [vmem:[#allocation6] sm:$0xff]  ;;  %v179_v13 = vld [vmem:[%s441_s4 + $0x30] sm:$0xff]  ;;  %v178_v14 = vld [vmem:[%s441_s4 + $0x28] sm:$0xff] }
  0x17   :  { %v180_v12 = vld [vmem:[%s441_s4 + $0x38] sm:$0xff]  ;;  %141 = vmatpush.msra.mxu1 %v120_v11  ;;  %v177_v15 = vld [vmem:[%s441_s4 + $0x20] sm:$0xff]  ;;  %v175_v22 = vld [vmem:[%s441_s4 + $0x10] sm:$0xff] }
  0x18   :  { %160 = vmatpush.msra.mxu2 %v117_v5  ;;  %193 = vmatpush.msra.mxu3 %v180_v12  ;;  %v225_v17 = vld [vmem:[#allocation7] ss:$0 sm:$0xff]  ;;  %v176_v21 = vld [vmem:[%s441_s4 + $0x18] sm:$0xff]  ;;  %v174_v23 = vld [vmem:[%s441_s4 + $0x8] sm:$0xff] }
  0x19   :  { %v173_v24 = vld [vmem:[%s441_s4] sm:$0xff] }
  0x1a   :  { %161 = vmatpush.msra.mxu2 %v116_v6  ;;  %194 = vmatpush.msra.mxu3 %v179_v13  ;;  %v226_v26 = vld [vmem:[#allocation7 + $0x1] ss:$0 sm:$0xff]  ;;  %v227_v31 = vld [vmem:[#allocation7 + $0x2] ss:$0 sm:$0xff] }
  0x1c   :  { %162 = vmatpush.msra.mxu2 %v115_v7  ;;  %195 = vmatpush.msra.mxu3 %v178_v14 }
  0x1e   :  { %163 = vmatpush.msra.mxu2 %v114_v8  ;;  %196 = vmatpush.msra.mxu3 %v177_v15 }
  0x20   :  { %164 = vmatpush.msra.mxu2 %v113_v9  ;;  %197 = vmatpush.msra.mxu3 %v176_v21 }
  0x22   :  { %165 = vmatpush.msra.mxu2 %v112_v10  ;;  %198 = vmatpush.msra.mxu3 %v175_v22 }
  0x24   :  { %199 = vmatpush.msra.mxu3 %v174_v23 }
  0x26   :  { %200 = vmatpush.msra.mxu3 %v173_v24 }
  0x86   :  { %v122_v16 = vpop.permute.xlu0 %121 }
  0x87   :  { %215 = vmatmul.msk.f32.vlgmr.msra.gmra.mxu1 %vm123_vm1, %v122_v16 }
  0x93   :  { %v108_v18 = vpop.f32.mrf.mxu0 }
  0x94   :  { %v109_v19 = vadd.f32 %v225_v17, %v108_v18 }
  0x96   :  { %v111_v20 = vmax.f32 %v109_v19, 0.0 }
  0x98   :  { %216 = vmatmul.msk.f32.vlgmr.msra.gmra.mxu2 %vm146_vm2, %v111_v20 }
 0x104   :  { %v143_v25 = vpop.f32.mrf.mxu1 }
 0x11b   :  { %v167_v27 = vpop.f32.mrf.mxu2 }
 0x11c   :  { %v168_v28 = vadd.f32 %v167_v27, %v143_v25 }
 0x11e   :  { %v171_v29 = vadd.f32 %v226_v26, %v168_v28 }
 0x120   :  { %v172_v30 = vmax.f32 %v171_v29, 0.0 }
 0x122   :  { %217 = vmatmul.msk.f32.vlgmr.msra.gmra.mxu3 %vm146_vm2, %v172_v30 }
 0x1a5   :  { %v202_v32 = vpop.f32.mrf.mxu3 }
 0x1a6   :  { %v203_v33 = vadd.f32 %v227_v31, %v202_v32 }
 0x1a8   :  { %206 = vst.msk [vmem:[%s443_s6] sm:$0xff] %vm205_vm3, %v203_v33 }
 0x1a9   :  { %211 = vsyncpa [#allocation3], 1 }
 0x1aa   :  { %212 = vsyncpa [#allocation5], 1 }
 0x1ab   :  { %213 = vsyncpa [#allocation8], 1 }

</bundles_post_ra>
